<compile_context>
chip_gen: v5e
topology: v5e:2x2
jax: 0.10.0
libtpu: 0.0.40
codegen_flags: <defaults>
</compile_context>

<pallas_src>
import jax
import jax.numpy as jnp
from jax import lax
from jax.experimental import pallas as pl
from jax.experimental.pallas import tpu as pltpu

IN_FEATURES = 784  # 28 * 28


def lincl_kernel(x_ref, w_ref, b_ref, o_ref):
    # x_ref: (TILE_N, 784) VMEM   w_ref: (784, 1) VMEM
    # b_ref: (1, 1) SMEM          o_ref: (TILE_N, 2) VMEM
    a = jnp.dot(x_ref[...], w_ref[...],
                preferred_element_type=jnp.float32) + b_ref[0, 0]       # (TILE_N, 1)

    # 2-class log-softmax over [a, 0]:
    #   lse = logsumexp([a, 0]) = softplus(a)  (stable form)
    #   out[:, 0] = a - lse ;  out[:, 1] = -lse
    lse = jnp.maximum(a, 0.0) + jnp.log1p(jnp.exp(-jnp.abs(a)))         # (TILE_N, 1)

    tn = o_ref.shape[0]
    col = lax.broadcasted_iota(jnp.int32, (tn, 2), 1)
    o_ref[...] = jnp.where(col == 0, a - lse, -lse).astype(o_ref.dtype)  # (TILE_N, 2)


def lincl_forward(x, w_t, b, *, tile_n=2048):
    """x: any shape with 784 elements per sample (e.g. NCHW (N,1,28,28)).
    w_t: (784, 1) = transpose of torch Linear weight.  b: (1,) or (1, 1)."""
    x2 = x.reshape(-1, IN_FEATURES).astype(jnp.float32)
    n = x2.shape[0]

    # Shrink tile for small batches (keep it a multiple of 8), then pad N up
    # to a multiple of the tile; padded rows are sliced off at the end.
    tile = min(tile_n, ((n + 7) // 8) * 8)
    tile = max(8, ((tile + 7) // 8) * 8)
    n_pad = pl.cdiv(n, tile) * tile
    if n_pad != n:
        x2 = jnp.pad(x2, ((0, n_pad - n), (0, 0)))

    b_smem = jnp.asarray(b, dtype=jnp.float32).reshape(1, 1)

    out = pl.pallas_call(
        lincl_kernel,
        out_shape=jax.ShapeDtypeStruct((n_pad, 2), jnp.float32),
        grid_spec=pltpu.PrefetchScalarGridSpec(
            num_scalar_prefetch=0,
            grid=(n_pad // tile,),
            in_specs=[
                pl.BlockSpec((tile, IN_FEATURES), lambda i: (i, 0)),     # x rows
                pl.BlockSpec((IN_FEATURES, 1), lambda i: (0, 0)),        # weight
                pl.BlockSpec(memory_space=pltpu.MemorySpace.SMEM),       # bias scalar
            ],
            out_specs=pl.BlockSpec((tile, 2), lambda i: (i, 0)),
        ),
        compiler_params=pltpu.CompilerParams(
            dimension_semantics=("parallel",),
            vmem_limit_bytes=48 << 20,
        ),
    )(x2, w_t, b_smem)

    return out[:n]


if __name__ == "__main__":
    key = jax.random.PRNGKey(0)
    kx, kw, kb = jax.random.split(key, 3)

    # Small MNIST-like batch: N=8, NCHW = (8, 1, 28, 28)
    x = jax.random.normal(kx, (8, 1, 28, 28), dtype=jnp.float32)

    # Deterministic parameter init (torch Linear(784, 1) shapes: W (1,784), b (1,))
    w = jax.random.normal(kw, (1, IN_FEATURES), dtype=jnp.float32) * 0.02
    b = jax.random.normal(kb, (1,), dtype=jnp.float32) * 0.02

    w_t = w.T  # (784, 1)

    out = lincl_forward(x, w_t, b)
    out = jax.block_until_ready(out)

    # Pure-JAX reference check
    a_ref = x.reshape(-1, IN_FEATURES) @ w_t + b[None, :]
    s_ref = jnp.concatenate([a_ref, jnp.zeros_like(a_ref)], axis=1)
    ref = jax.nn.log_softmax(s_ref, axis=1)
    assert out.shape == (8, 2)
    assert jnp.allclose(out, ref, atol=1e-5, rtol=1e-5), "mismatch vs reference"

    print("KERNEL_OK")
</pallas_src>

<mosaic_0001>
module attributes {stable_mosaic.version = 11 : i64} {
  func.func @lincl_kernel(%arg0: i32, %arg1: memref<8x784xf32, #tpu.memory_space<vmem>>, %arg2: memref<784x1xf32, #tpu.memory_space<vmem>>, %arg3: memref<1x1xf32, #tpu.memory_space<smem>>, %arg4: memref<8x2xf32, #tpu.memory_space<vmem>>) attributes {dimension_semantics = [#tpu.dimension_semantics<parallel>], iteration_bounds = array<i64: 1>, scalar_prefetch = 0 : i64, scratch_operands = 0 : i64, tpu.core_type = #tpu.core_type<tc>, window_params = [{transform_indices = @transform_0, window_bounds = array<i64: 8, 784>}, {pipeline_mode = #tpu.pipeline_mode<synchronous>, transform_indices = @transform_1, window_bounds = array<i64: 784, 1>}, {transform_indices = @transform_2, window_bounds = array<i64: 1, 1>}, {transform_indices = @transform_3, window_bounds = array<i64: 8, 2>}]} {
    %c0 = arith.constant 0 : index
    %c0_0 = arith.constant 0 : index
    %0 = vector.load %arg1[%c0, %c0_0] : memref<8x784xf32, #tpu.memory_space<vmem>>, vector<8x784xf32>
    %c0_1 = arith.constant 0 : index
    %c0_2 = arith.constant 0 : index
    %1 = vector.load %arg2[%c0_1, %c0_2] : memref<784x1xf32, #tpu.memory_space<vmem>>, vector<784x1xf32>
    %cst = arith.constant dense<0.000000e+00> : vector<8x1xf32>
    %2 = tpu.matmul %0, %1, %cst {dimension_numbers = #tpu.dot_dimension_numbers<[1], [0], [0], [1], [0, 0, 1, 1], [], []>} : vector<8x784xf32>, vector<784x1xf32>, vector<8x1xf32> -> vector<8x1xf32>
    %c0_3 = arith.constant 0 : index
    %c0_4 = arith.constant 0 : index
    %3 = memref.load %arg3[%c0_3, %c0_4] : memref<1x1xf32, #tpu.memory_space<smem>>
    %4 = vector.broadcast %3 : f32 to vector<8x1xf32>
    %5 = arith.addf %2, %4 : vector<8x1xf32>
    %cst_5 = arith.constant 0.000000e+00 : f32
    %6 = vector.broadcast %cst_5 : f32 to vector<8x1xf32>
    %7 = arith.maximumf %5, %6 : vector<8x1xf32>
    %8 = math.absf %5 : vector<8x1xf32>
    %cst_6 = arith.constant 0.000000e+00 : f32
    %9 = vector.broadcast %cst_6 : f32 to vector<8x1xf32>
    %10 = arith.subf %9, %8 : vector<8x1xf32>
    %11 = math.exp %10 : vector<8x1xf32>
    %12 = math.log1p %11 : vector<8x1xf32>
    %13 = arith.addf %7, %12 : vector<8x1xf32>
    %14 = tpu.iota {dimensions = array<i32: 1>} : vector<8x2xi32>
    %c0_i32 = arith.constant 0 : i32
    %15 = vector.broadcast %c0_i32 : i32 to vector<8x2xi32>
    %16 = arith.cmpi eq, %14, %15 : vector<8x2xi32>
    %17 = arith.subf %5, %13 : vector<8x1xf32>
    %cst_7 = arith.constant 0.000000e+00 : f32
    %18 = vector.broadcast %cst_7 : f32 to vector<8x1xf32>
    %19 = arith.subf %18, %13 : vector<8x1xf32>
    %20 = vector.shape_cast %17 : vector<8x1xf32> to vector<8x1xf32>
    %21 = vector.broadcast %20 : vector<8x1xf32> to vector<8x2xf32>
    %22 = vector.shape_cast %19 : vector<8x1xf32> to vector<8x1xf32>
    %23 = vector.broadcast %22 : vector<8x1xf32> to vector<8x2xf32>
    %24 = arith.select %16, %21, %23 : vector<8x2xi1>, vector<8x2xf32>
    %c0_8 = arith.constant 0 : index
    %c0_9 = arith.constant 0 : index
    %25 = vector.load %arg4[%c0_8, %c0_9] : memref<8x2xf32, #tpu.memory_space<vmem>>, vector<8x2xf32>
    tpu.vector_store %arg4[%c0_8, %c0_9], %24 {strides = array<i32>} : memref<8x2xf32, #tpu.memory_space<vmem>>, vector<8x2xf32>,
    return
  }
  func.func @transform_0(%arg0: i32) -> (i32, i32) {
    %c0_i32 = arith.constant 0 : i32
    %c0_i32_0 = arith.constant 0 : i32
    return %arg0, %c0_i32 : i32, i32
  }
  func.func @transform_1(%arg0: i32) -> (i32, i32) {
    %c0_i32 = arith.constant 0 : i32
    %c0_i32_0 = arith.constant 0 : i32
    %c0_i32_1 = arith.constant 0 : i32
    return %c0_i32, %c0_i32_0 : i32, i32
  }
  func.func @transform_2(%arg0: i32) -> (i32, i32) {
    %c0_i32 = arith.constant 0 : i32
    %c0_i32_0 = arith.constant 0 : i32
    %c0_i32_1 = arith.constant 0 : i32
    return %c0_i32, %c0_i32_0 : i32, i32
  }
  func.func @transform_3(%arg0: i32) -> (i32, i32) {
    %c0_i32 = arith.constant 0 : i32
    %c0_i32_0 = arith.constant 0 : i32
    return %arg0, %c0_i32 : i32, i32
  }
}

</mosaic_0001>

<bundles_post_ra>
// kernel: tpu_custom_call.1
= control target key start
LH: loop header
LB: loop body
LE: loop exit
PB: predicated region body
PF: predicated region fallthrough
CT: control target
= control target key end

     0   :  { %vm122_vm0 = vcmask 130048   ;;  %vm297_vm3 = vcmask 15360   ;;  %s652_s1 = inlined_call_operand.vmem [shape: f32[784,1], index: 1, kind: input, shape index: {}]   ;;  %s653_s0 = inlined_call_operand.vmem [shape: f32[8,784], index: 0, kind: input, shape index: {}]   ;;  %s654_s2 = inlined_call_operand.<no memory space> [shape: f32[1,1], index: 2, kind: input, shape index: {}]   ;;  %s655_s3 = inlined_call_operand.vmem [shape: f32[8,2], index: 3, kind: output, shape index: {}]  }
   0x1   :  { %v37_v0 = vld [vmem:[%s652_s1 + $0x78] sm:$0xff]  ;;  %v36_v1 = vld [vmem:[%s652_s1 + $0x70] sm:$0xff]  ;;  %v35_v4 = vld [vmem:[%s652_s1 + $0x68] sm:$0xff] }
   0x2   :  { %v53_v2 = vld [vmem:[%s652_s1 + $0xf8] sm:$0xff]  ;;  %126 = vmatpush.msra.mxu0 %v37_v0  ;;  %v52_v3 = vld [vmem:[%s652_s1 + $0xf0] sm:$0xff]  ;;  %v51_v5 = vld [vmem:[%s652_s1 + $0xe8] sm:$0xff] }
   0x3   :  { %146 = vmatpush.msra.mxu1 %v53_v2  ;;  %v34_v6 = vld [vmem:[%s652_s1 + $0x60] sm:$0xff]  ;;  %v33_v8 = vld [vmem:[%s652_s1 + $0x58] sm:$0xff]  ;;  %v32_v10 = vld [vmem:[%s652_s1 + $0x50] sm:$0xff] }
   0x4   :  { %127 = vmatpush.msra.mxu0 %v36_v1  ;;  %v50_v7 = vld [vmem:[%s652_s1 + $0xe0] sm:$0xff]  ;;  %v49_v9 = vld [vmem:[%s652_s1 + $0xd8] sm:$0xff]  ;;  %v48_v12 = vld [vmem:[%s652_s1 + $0xd0] sm:$0xff] }
   0x5   :  { %147 = vmatpush.msra.mxu1 %v52_v3  ;;  %v69_v11 = vld [vmem:[%s652_s1 + $0x178] sm:$0xff]  ;;  %v68_v13 = vld [vmem:[%s652_s1 + $0x170] sm:$0xff]  ;;  %v67_v15 = vld [vmem:[%s652_s1 + $0x168] sm:$0xff] }
   0x6   :  { %128 = vmatpush.msra.mxu0 %v35_v4  ;;  %166 = vmatpush.msra.mxu2 %v69_v11  ;;  %v85_v14 = vld [vmem:[%s652_s1 + $0x1f8] sm:$0xff]  ;;  %v84_v16 = vld [vmem:[%s652_s1 + $0x1f0] sm:$0xff]  ;;  %v31_v17 = vld [vmem:[%s652_s1 + $0x48] sm:$0xff] }
   0x7   :  { %148 = vmatpush.msra.mxu1 %v51_v5  ;;  %v47_v18 = vld [vmem:[%s652_s1 + $0xc8] sm:$0xff]  ;;  %186 = vmatpush.msra.mxu3 %v85_v14  ;;  %v66_v19 = vld [vmem:[%s652_s1 + $0x160] sm:$0xff]  ;;  %v65_v23 = vld [vmem:[%s652_s1 + $0x158] sm:$0xff] }
   0x8   :  { %129 = vmatpush.msra.mxu0 %v34_v6  ;;  %167 = vmatpush.msra.mxu2 %v68_v13  ;;  %v83_v20 = vld [vmem:[%s652_s1 + $0x1e8] sm:$0xff]  ;;  %v30_v21 = vld [vmem:[%s652_s1 + $0x40] sm:$0xff]  ;;  %v29_v25 = vld [vmem:[%s652_s1 + $0x38] sm:$0xff] }
   0x9   :  { %149 = vmatpush.msra.mxu1 %v50_v7  ;;  %v46_v22 = vld [vmem:[%s652_s1 + $0xc0] sm:$0xff]  ;;  %187 = vmatpush.msra.mxu3 %v84_v16  ;;  %v45_v26 = vld [vmem:[%s652_s1 + $0xb8] sm:$0xff]  ;;  %v64_v27 = vld [vmem:[%s652_s1 + $0x150] sm:$0xff] }
   0xa   :  { %130 = vmatpush.msra.mxu0 %v33_v8  ;;  %168 = vmatpush.msra.mxu2 %v67_v15  ;;  %v82_v24 = vld [vmem:[%s652_s1 + $0x1e0] sm:$0xff]  ;;  %v81_v28 = vld [vmem:[%s652_s1 + $0x1d8] sm:$0xff]  ;;  %v28_v29 = vld [vmem:[%s652_s1 + $0x30] sm:$0xff] }
   0xb   :  { %150 = vmatpush.msra.mxu1 %v49_v9  ;;  %188 = vmatpush.msra.mxu3 %v83_v20  ;;  %v44_v30 = vld [vmem:[%s652_s1 + $0xb0] sm:$0xff]  ;;  %v63_v31 = vld [vmem:[%s652_s1 + $0x148] sm:$0xff]  ;;  %v62_v35 = vld [vmem:[%s652_s1 + $0x140] sm:$0xff] }
   0xc   :  { %131 = vmatpush.msra.mxu0 %v32_v10  ;;  %169 = vmatpush.msra.mxu2 %v66_v19  ;;  %v80_v32 = vld [vmem:[%s652_s1 + $0x1d0] sm:$0xff]  ;;  %v27_v33 = vld [vmem:[%s652_s1 + $0x28] sm:$0xff]  ;;  %v26_v37 = vld [vmem:[%s652_s1 + $0x20] sm:$0xff] }
   0xd   :  { %151 = vmatpush.msra.mxu1 %v48_v12  ;;  %189 = vmatpush.msra.mxu3 %v82_v24  ;;  %v43_v34 = vld [vmem:[%s652_s1 + $0xa8] sm:$0xff]  ;;  %v42_v38 = vld [vmem:[%s652_s1 + $0xa0] sm:$0xff]  ;;  %v61_v39 = vld [vmem:[%s652_s1 + $0x138] sm:$0xff] }
   0xe   :  { %132 = vmatpush.msra.mxu0 %v31_v17  ;;  %170 = vmatpush.msra.mxu2 %v65_v23  ;;  %v79_v36 = vld [vmem:[%s652_s1 + $0x1c8] sm:$0xff]  ;;  %v78_v40 = vld [vmem:[%s652_s1 + $0x1c0] sm:$0xff]  ;;  %v25_v41 = vld [vmem:[%s652_s1 + $0x18] sm:$0xff] }
   0xf   :  { %152 = vmatpush.msra.mxu1 %v47_v18  ;;  %190 = vmatpush.msra.mxu3 %v81_v28  ;;  %v41_v42 = vld [vmem:[%s652_s1 + $0x98] sm:$0xff]  ;;  %v60_v43 = vld [vmem:[%s652_s1 + $0x130] sm:$0xff]  ;;  %v59_v47 = vld [vmem:[%s652_s1 + $0x128] sm:$0xff] }
  0x10   :  { %133 = vmatpush.msra.mxu0 %v30_v21  ;;  %171 = vmatpush.msra.mxu2 %v64_v27  ;;  %v77_v44 = vld [vmem:[%s652_s1 + $0x1b8] sm:$0xff]  ;;  %v24_v45 = vld [vmem:[%s652_s1 + $0x10] sm:$0xff]  ;;  %v23_v49 = vld [vmem:[%s652_s1 + $0x8] sm:$0xff] }
  0x11   :  { %153 = vmatpush.msra.mxu1 %v46_v22  ;;  %191 = vmatpush.msra.mxu3 %v80_v32  ;;  %v40_v46 = vld [vmem:[%s652_s1 + $0x90] sm:$0xff]  ;;  %v39_v50 = vld [vmem:[%s652_s1 + $0x88] sm:$0xff]  ;;  %v58_v51 = vld [vmem:[%s652_s1 + $0x120] sm:$0xff] }
  0x12   :  { %134 = vmatpush.msra.mxu0 %v29_v25  ;;  %172 = vmatpush.msra.mxu2 %v63_v31  ;;  %v76_v48 = vld [vmem:[%s652_s1 + $0x1b0] sm:$0xff]  ;;  %v75_v52 = vld [vmem:[%s652_s1 + $0x1a8] sm:$0xff]  ;;  %v22_v53 = vld [vmem:[%s652_s1] sm:$0xff] }
  0x13   :  { %154 = vmatpush.msra.mxu1 %v45_v26  ;;  %192 = vmatpush.msra.mxu3 %v79_v36  ;;  %v38_v54 = vld [vmem:[%s652_s1 + $0x80] sm:$0xff]  ;;  %v101_v55 = vld [vmem:[%s652_s1 + $0x278] sm:$0xff]  ;;  %v100_v59 = vld [vmem:[%s652_s1 + $0x270] sm:$0xff] }
  0x14   :  { %135 = vmatpush.msra.mxu0 %v28_v29  ;;  %173 = vmatpush.msra.mxu2 %v62_v35  ;;  %v117_v56 = vld [vmem:[%s652_s1 + $0x2f8] sm:$0xff]  ;;  %v74_v58 = vld [vmem:[%s652_s1 + $0x1a0] sm:$0xff]  ;;  %v116_v60 = vld [vmem:[%s652_s1 + $0x2f0] sm:$0xff] }
  0x15   :  { %155 = vmatpush.msra.mxu1 %v44_v30  ;;  %193 = vmatpush.msra.mxu3 %v78_v40  ;;  %v57_v57 = vld [vmem:[%s652_s1 + $0x118] sm:$0xff]  ;;  %v56_v61 = vld [vmem:[%s652_s1 + $0x110] sm:$0xff]  ;;  %v99_v63 = vld [vmem:[%s652_s1 + $0x268] sm:$0xff] }
  0x16   :  { %136 = vmatpush.msra.mxu0 %v27_v33  ;;  %174 = vmatpush.msra.mxu2 %v61_v39  ;;  %v73_v62 = vld [vmem:[%s652_s1 + $0x198] sm:$0xff]  ;;  %v115_v0 = vld [vmem:[%s652_s1 + $0x2e8] sm:$0xff]  ;;  %v72_v2 = vld [vmem:[%s652_s1 + $0x190] sm:$0xff] }
  0x17   :  { %156 = vmatpush.msra.mxu1 %v43_v34  ;;  %194 = vmatpush.msra.mxu3 %v77_v44  ;;  %v55_v1 = vld [vmem:[%s652_s1 + $0x108] sm:$0xff]  ;;  %v98_v3 = vld [vmem:[%s652_s1 + $0x260] sm:$0xff]  ;;  %v97_v7 = vld [vmem:[%s652_s1 + $0x258] sm:$0xff] }
  0x18   :  { %137 = vmatpush.msra.mxu0 %v26_v37  ;;  %175 = vmatpush.msra.mxu2 %v60_v43  ;;  %v114_v4 = vld [vmem:[%s652_s1 + $0x2e0] sm:$0xff]  ;;  %v71_v6 = vld [vmem:[%s652_s1 + $0x188] sm:$0xff]  ;;  %v113_v8 = vld [vmem:[%s652_s1 + $0x2d8] sm:$0xff]  ;;  %v310_v43 = vmov 0  }
  0x19   :  { %157 = vmatpush.msra.mxu1 %v42_v38  ;;  %195 = vmatpush.msra.mxu3 %v76_v48  ;;  %v54_v5 = vld [vmem:[%s652_s1 + $0x100] sm:$0xff]  ;;  %v17_v9 = vld [vmem:[%s653_s0 + $0x10] sm:$0xff]  ;;  %v119_v13 = vld [vmem:[%s652_s1 + $0x308] sm:$0xff] }
  0x1a   :  { %138 = vmatpush.msra.mxu0 %v25_v41  ;;  %176 = vmatpush.msra.mxu2 %v59_v47  ;;  %v70_v10 = vld [vmem:[%s652_s1 + $0x180] sm:$0xff]  ;;  %v96_v11 = vld [vmem:[%s652_s1 + $0x250] sm:$0xff]  ;;  %v95_v15 = vld [vmem:[%s652_s1 + $0x248] sm:$0xff]  ;;  %v121_v41 = vstv %s654_s2 }
  0x1b   :  { %158 = vmatpush.msra.mxu1 %v41_v42  ;;  %196 = vmatpush.msra.mxu3 %v75_v52  ;;  %v112_v12 = vld [vmem:[%s652_s1 + $0x2d0] sm:$0xff]  ;;  %v15_v14 = vld [vmem:[%s653_s0] sm:$0xff]  ;;  %v111_v16 = vld [vmem:[%s652_s1 + $0x2c8] sm:$0xff] }
  0x1c   :  { %139 = vmatpush.msra.mxu0 %v24_v45  ;;  %177 = vmatpush.msra.mxu2 %v58_v51  ;;  %v18_v17 = vld [vmem:[%s653_s0 + $0x18] sm:$0xff]  ;;  %v16_v18 = vld [vmem:[%s653_s0 + $0x8] sm:$0xff]  ;;  %v94_v19 = vld [vmem:[%s652_s1 + $0x240] sm:$0xff] }
  0x1d   :  { %159 = vmatpush.msra.mxu1 %v40_v46  ;;  %197 = vmatpush.msra.mxu3 %v74_v58  ;;  %v110_v20 = vld [vmem:[%s652_s1 + $0x2c0] sm:$0xff]  ;;  %v93_v22 = vld [vmem:[%s652_s1 + $0x238] sm:$0xff]  ;;  %v21_v24 = vld [vmem:[%s653_s0 + $0x30] sm:$0xff] }
  0x1e   :  { %140 = vmatpush.msra.mxu0 %v23_v49  ;;  %178 = vmatpush.msra.mxu2 %v57_v57  ;;  %v118_v21 = vld [vmem:[%s652_s1 + $0x300] sm:$0xff]  ;;  %v109_v23 = vld [vmem:[%s652_s1 + $0x2b8] sm:$0xff]  ;;  %v92_v25 = vld [vmem:[%s652_s1 + $0x230] sm:$0xff] }
  0x1f   :  { %160 = vmatpush.msra.mxu1 %v39_v50  ;;  %198 = vmatpush.msra.mxu3 %v73_v62  ;;  %v108_v26 = vld [vmem:[%s652_s1 + $0x2b0] sm:$0xff]  ;;  %v91_v27 = vld [vmem:[%s652_s1 + $0x228] sm:$0xff]  ;;  %v90_v29 = vld [vmem:[%s652_s1 + $0x220] sm:$0xff] }
  0x20   :  { %141 = vmatpush.msra.mxu0 %v22_v53  ;;  %179 = vmatpush.msra.mxu2 %v56_v61  ;;  %v107_v28 = vld [vmem:[%s652_s1 + $0x2a8] sm:$0xff]  ;;  %v106_v30 = vld [vmem:[%s652_s1 + $0x2a0] sm:$0xff]  ;;  %v89_v31 = vld [vmem:[%s652_s1 + $0x218] sm:$0xff] }
  0x21   :  { %161 = vmatpush.msra.mxu1 %v38_v54  ;;  %199 = vmatpush.msra.mxu3 %v72_v2  ;;  %v105_v32 = vld [vmem:[%s652_s1 + $0x298] sm:$0xff]  ;;  %v88_v33 = vld [vmem:[%s652_s1 + $0x210] sm:$0xff]  ;;  %v87_v35 = vld [vmem:[%s652_s1 + $0x208] sm:$0xff] }
  0x22   :  { %206 = vmatpush.msrb.mxu0 %v101_v55  ;;  %180 = vmatpush.msra.mxu2 %v55_v1  ;;  %v104_v34 = vld [vmem:[%s652_s1 + $0x290] sm:$0xff]  ;;  %v103_v36 = vld [vmem:[%s652_s1 + $0x288] sm:$0xff]  ;;  %v86_v37 = vld [vmem:[%s652_s1 + $0x200] sm:$0xff] }
  0x23   :  { %226 = vmatpush.msrb.mxu1 %v117_v56  ;;  %200 = vmatpush.msra.mxu3 %v71_v6  ;;  %v102_v38 = vld [vmem:[%s652_s1 + $0x280] sm:$0xff]  ;;  %v20_v40 = vld [vmem:[%s653_s0 + $0x28] sm:$0xff] }
  0x24   :  { %207 = vmatpush.msrb.mxu0 %v100_v59  ;;  %181 = vmatpush.msra.mxu2 %v54_v5  ;;  %v19_v39 = vld [vmem:[%s653_s0 + $0x20] sm:$0xff] }
  0x25   :  { %227 = vmatpush.msrb.mxu1 %v116_v60  ;;  %182 = vmatmul.f32.vlgmr.msra.gmra.mxu2 %v17_v9  ;;  %v281_v9 = vlaneseq }
  0x26   :  { %208 = vmatpush.msrb.mxu0 %v99_v63  ;;  %201 = vmatpush.msra.mxu3 %v70_v10 }
  0x27   :  { %228 = vmatpush.msrb.mxu1 %v115_v0  ;;  %260 = vmatpush.msrb.mxu2 %v119_v13 }
  0x28   :  { %209 = vmatpush.msrb.mxu0 %v98_v3  ;;  %202 = vmatmul.f32.vlgmr.msra.gmra.mxu3 %v18_v17 }
  0x29   :  { %229 = vmatpush.msrb.mxu1 %v114_v4  ;;  %142 = vmatmul.f32.vlgmr.msra.gmra.mxu0 %v15_v14 }
  0x2a   :  { %210 = vmatpush.msrb.mxu0 %v97_v7  ;;  %162 = vmatmul.f32.vlgmr.msra.gmra.mxu1 %v16_v18 }
  0x2b   :  { %230 = vmatpush.msrb.mxu1 %v113_v8  ;;  %261 = vmatpush.msrb.mxu2 %v118_v21 }
  0x2c   :  { %211 = vmatpush.msrb.mxu0 %v96_v11  ;;  %305 = vset.pattern.permute.xlu0 %v310_v43  ;;  %v282_v11 = vand.u32 127, %v281_v9 }
  0x2d   :  { %231 = vmatpush.msrb.mxu1 %v112_v12  ;;  %303 = vmatmul.msk.f32.vlgmr.msrb.gmra.mxu2 %vm122_vm0, %v21_v24 }
  0x2e   :  { %212 = vmatpush.msrb.mxu0 %v95_v15  ;;  %vm283_vm2 = vcmp.eq.s32.totalorder %v282_v11, 0 }
  0x2f   :  { %232 = vmatpush.msrb.mxu1 %v111_v16 }
  0x30   :  { %213 = vmatpush.msrb.mxu0 %v94_v19 }
  0x31   :  { %233 = vmatpush.msrb.mxu1 %v110_v20 }
  0x32   :  { %214 = vmatpush.msrb.mxu0 %v93_v22 }
  0x33   :  { %234 = vmatpush.msrb.mxu1 %v109_v23 }
  0x34   :  { %215 = vmatpush.msrb.mxu0 %v92_v25 }
  0x35   :  { %235 = vmatpush.msrb.mxu1 %v108_v26 }
  0x36   :  { %216 = vmatpush.msrb.mxu0 %v91_v27 }
  0x37   :  { %236 = vmatpush.msrb.mxu1 %v107_v28 }
  0x38   :  { %217 = vmatpush.msrb.mxu0 %v90_v29 }
  0x39   :  { %237 = vmatpush.msrb.mxu1 %v106_v30 }
  0x3a   :  { %218 = vmatpush.msrb.mxu0 %v89_v31 }
  0x3b   :  { %238 = vmatpush.msrb.mxu1 %v105_v32 }
  0x3c   :  { %219 = vmatpush.msrb.mxu0 %v88_v33 }
  0x3d   :  { %239 = vmatpush.msrb.mxu1 %v104_v34 }
  0x3e   :  { %220 = vmatpush.msrb.mxu0 %v87_v35 }
  0x3f   :  { %240 = vmatpush.msrb.mxu1 %v103_v36 }
  0x40   :  { %221 = vmatpush.msrb.mxu0 %v86_v37 }
  0x41   :  { %241 = vmatpush.msrb.mxu1 %v102_v38  ;;  %222 = vmatmul.f32.vlgmr.msrb.gmra.mxu0 %v19_v39 }
  0x42   :  { %242 = vmatmul.f32.vlgmr.msrb.gmra.mxu1 %v20_v40 }
  0xa6   :  { %v143_v42 = vpop.f32.mrf.mxu0 }
  0xa7   :  { %v144_v44 = vadd.f32 %v143_v42, %v121_v41  ;;  %v163_v45 = vpop.f32.mrf.mxu1 }
  0xa8   :  { %v183_v47 = vpop.f32.mrf.mxu2 }
  0xa9   :  { %v164_v46 = vadd.f32 %v163_v45, %v144_v44 }
  0xab   :  { %v184_v48 = vadd.f32 %v183_v47, %v164_v46  ;;  %v203_v49 = vpop.f32.mrf.mxu3 }
  0xad   :  { %v204_v50 = vadd.f32 %v203_v49, %v184_v48 }
  0xb0   :  { %v263_v54 = vpop.f32.mrf.mxu2 }
  0xbe   :  { %v223_v51 = vpop.f32.mrf.mxu0 }
  0xbf   :  { %v243_v52 = vpop.f32.mrf.mxu1  ;;  %v224_v53 = vadd.f32 %v223_v51, %v204_v50 }
  0xc1   :  { %v244_v55 = vadd.f32 %v243_v52, %v224_v53 }
  0xc3   :  { %v264_v56 = vadd.f32 %v263_v54, %v244_v55 }
  0xc5   :  { %v267_v57 = vand.u32 2147483647, %v264_v56  ;;  %v266_v4 = vmax.f32 %v264_v56, 0.0 }
  0xc7   :  { %v268_v58 = vsub.f32 0.0, %v267_v57 }
  0xc9   :  { %v269_v59 = vmul.f32 1.442695, %v268_v58 }
  0xcb   :  { %306 = vpow2.f32 %v269_v59 }
  0xd1   :  { %v307_v60 = vpop.eup %306 }
  0xd2   :  { %v271_v61 = vadd.f32 1.0, %v307_v60  ;;  %v274_v62 = vmul.f32 -0.5, %v307_v60  ;;  %v277_v0 = vand.u32 2147483647, %v307_v60 }
  0xd4   :  { %308 = vlog2.f32 %v271_v61  ;;  %v275_v63 = vadd.f32 1.0, %v274_v62  ;;  %vm278_vm1 = vcmp.lt.f32.partialorder %v277_v0, 0.0004427343 }
  0xd6   :  { %v276_v3 = vmul.f32 %v307_v60, %v275_v63 }
  0xda   :  { %v309_v1 = vpop.eup %308 }
  0xdb   :  { %v273_v2 = vmul.f32 0.6931472, %v309_v1 }
  0xdd   :  { %v279_v5 = vsel %vm278_vm1, %v276_v3, %v273_v2 }
  0xde   :  { %v280_v6 = vadd.f32 %v279_v5, %v266_v4 }
  0xe0   :  { %v284_v7 = vsub.f32 %v264_v56, %v280_v6  ;;  %v285_v8 = vsub.f32 0.0, %v280_v6 }
  0xe2   :  { %288 = vperm.xlu0 %305, %v284_v7  }
  0xea   :  { %293 = vperm.xlu0 %305, %v285_v8  }
 0x154   :  { %v289_v10 = vpop.permute.xlu0 %288 }
 0x15c   :  { %v294_v12 = vpop.permute.xlu0 %293 }
 0x15d   :  { %v296_v13 = vsel %vm283_vm2, %v289_v10, %v294_v12 }
 0x15e   :  { %298 = vst.msk [vmem:[%s655_s3] sm:$0xff] %vm297_vm3, %v296_v13 }

</bundles_post_ra>
